<compile_context>
chip_gen: v7x
topology: tpu7x:2x2x1
jax: 0.10.0
libtpu: 0.0.40
codegen_flags: <defaults>
</compile_context>

<pallas_src>
import jax
import jax.numpy as jnp
from jax.experimental import pallas as pl
from jax.experimental.pallas import tpu as pltpu


def _round_up(n, m):
    return ((n + m - 1) // m) * m


def _two_tensorcore_chip():
    """True on 2-TensorCore-per-chip parts (v7x); perf heuristic only."""
    try:
        kind = jax.devices()[0].device_kind.lower()
    except Exception:
        return False
    return ("v7" in kind) or ("7x" in kind)


def _make_mlp_kernel(layer_in_dims, lane, compute_dtype):
    """Kernel computing the full MLP (all matmuls + ReLUs) for one batch tile.

    Weights come in as a single packed (sum_in, lane) slab and biases as a
    single (1, n_layers*lane) slab; per-layer pieces are sliced with static
    offsets (all multiples of 16 sublanes / 128 lanes)."""
    n_layers = len(layer_in_dims)
    offsets = []
    off = 0
    for d in layer_in_dims:
        offsets.append(off)
        off += d

    def kernel(x_ref, w_ref, b_ref, o_ref):
        h = x_ref[...]  # already compute_dtype (cast done in the wrapper)
        for i in range(n_layers):
            w = w_ref[offsets[i]:offsets[i] + layer_in_dims[i], :]
            b = b_ref[:, i * lane:(i + 1) * lane]
            # MXU matmul with f32 accumulation; bias add + ReLU in f32 (VPU).
            h = jnp.dot(h, w, preferred_element_type=jnp.float32) + b
            if i < n_layers - 1:  # ReLU after every layer but the last
                h = jnp.maximum(h, 0.0).astype(compute_dtype)
        o_ref[...] = h.astype(o_ref.dtype)

    return kernel


def prepare_params(weights, biases, *, use_bf16=True, lane_pad=128):
    """One-time parameter preparation (do NOT call per forward step).

    * every layer's out-dim (and the following layer's in-dim) is zero-padded
      to a multiple of 128 lanes -> lane-dense activations end to end,
    * first layer's in-dim is padded to a multiple of 16 sublanes,
    * all weights are packed into ONE (sum_in, lane) slab (bf16 by default),
    * all biases into ONE (1, n_layers*lane) f32 slab.

    Returns (w_slab, b_slab, layer_in_dims, lane, out_dim); the last three are
    static metadata for the forward call.
    """
    out_dim = int(weights[-1].shape[1])
    w_dtype = jnp.bfloat16 if use_bf16 else jnp.float32
    lane = max(_round_up(int(w.shape[1]), lane_pad) for w in weights)

    padded_w, padded_b, layer_in_dims = [], [], []
    for i, (w, b) in enumerate(zip(weights, biases)):
        fan_in, fan_out = int(w.shape[0]), int(w.shape[1])
        in_pad = _round_up(fan_in, 16) if i == 0 else lane
        wp = jnp.zeros((in_pad, lane), jnp.float32)
        wp = wp.at[:fan_in, :fan_out].set(jnp.asarray(w, jnp.float32))
        bp = jnp.zeros((lane,), jnp.float32)
        bp = bp.at[:fan_out].set(jnp.asarray(b, jnp.float32))
        padded_w.append(wp.astype(w_dtype))
        padded_b.append(bp)
        layer_in_dims.append(in_pad)

    w_slab = jnp.concatenate(padded_w, axis=0)        # (sum_in, lane)
    b_slab = jnp.concatenate(padded_b)[None, :]       # (1, n_layers*lane) f32
    return w_slab, b_slab, tuple(layer_in_dims), lane, out_dim


def factor_reward_model_forward(x, w_slab, b_slab, *, layer_in_dims, lane,
                                out_dim, batch_tile=1024, use_bf16=True,
                                two_tc=None):
    """Pallas forward pass of Factor_Reward_Model.

    Args:
      x:             (B, input_dim) float32.
      w_slab/b_slab: packed params from prepare_params.
      layer_in_dims: static tuple of per-layer (padded) in-dims.
      lane:          static lane width (128).
      out_dim:       original (unpadded) output dimension — static.
    Returns:
      (B, out_dim) float32.
    """
    B, in_dim = x.shape
    in_pad0 = layer_in_dims[0]
    compute_dtype = jnp.bfloat16 if use_bf16 else jnp.float32
    sub = 16 if use_bf16 else 8

    if two_tc is None:
        two_tc = _two_tensorcore_chip()

    # --- batch tiling --------------------------------------------------------
    # Per-step pipeline overhead (~0.35us) dominates this tiny model, so use
    # the biggest tile that covers the batch (cap 1024 rows ~= <1 MiB VMEM).
    # Only split into 2 steps on 2-TC chips (v7x) when each half gets >=128
    # rows; on single-TC chips the grid is a sequential loop and splitting a
    # small batch is pure overhead.
    b_min = _round_up(max(B, 1), sub)
    cap = _round_up(max(batch_tile, sub), sub)
    if two_tc and b_min >= 256:
        tile = min(cap, _round_up(pl.cdiv(b_min, 2), sub))  # 1 step per core
    else:
        tile = min(cap, b_min)
    grid = pl.cdiv(b_min, tile)
    b_pad = grid * tile

    # Pad batch / input lanes once, cast to bf16 in the wrapper (halves the
    # x HBM->VMEM stream; removes the per-tile VPU cast).
    xp = x
    if in_pad0 != in_dim:
        xp = jnp.pad(xp, ((0, 0), (0, in_pad0 - in_dim)))
    if b_pad != B:
        xp = jnp.pad(xp, ((0, b_pad - B), (0, 0)))
    xp = xp.astype(compute_dtype)

    # --- specs ---------------------------------------------------------------
    # Constant-index weight/bias slabs: the Pallas TPU pipeline skips re-DMAing
    # blocks whose index is unchanged across grid steps, so both slabs land in
    # VMEM once (~140 KiB) and are reused by every batch tile.
    in_specs = [
        pl.BlockSpec((tile, in_pad0), lambda i: (i, 0)),
        pl.BlockSpec(w_slab.shape, lambda i: (0, 0)),
        pl.BlockSpec(b_slab.shape, lambda i: (0, 0)),
    ]
    # Lane-dense bf16 output (last dim = 128) -> unmasked vector stores and
    # half the writeback bytes of an f32 padded output.
    out_spec = pl.BlockSpec((tile, lane), lambda i: (i, 0))
    out_dtype = compute_dtype

    flops = 2 * b_pad * sum(int(d) * lane for d in layer_in_dims)
    bytes_accessed = int(
        b_pad * in_pad0 * jnp.dtype(compute_dtype).itemsize
        + int(w_slab.size) * w_slab.dtype.itemsize
        + int(b_slab.size) * b_slab.dtype.itemsize
        + b_pad * lane * jnp.dtype(out_dtype).itemsize)

    out = pl.pallas_call(
        _make_mlp_kernel(layer_in_dims, lane, compute_dtype),
        out_shape=jax.ShapeDtypeStruct((b_pad, lane), out_dtype),
        grid=(grid,),
        in_specs=in_specs,
        out_specs=out_spec,
        compiler_params=pltpu.CompilerParams(
            dimension_semantics=("parallel",)),
        cost_estimate=pl.CostEstimate(
            flops=flops, transcendentals=0, bytes_accessed=bytes_accessed),
    )(xp, w_slab, b_slab)

    return out[:B, :out_dim].astype(jnp.float32)


def init_params(key, input_dim, hidden_dim, output_dim, n_layers):
    """Kaiming-normal-ish init (matches init_weights intent): W ~ N(0, 2/fan_in),
    b = 0.  Weights returned as (in, out)."""
    dims = [input_dim] + [hidden_dim] * (n_layers - 1) + [output_dim]
    weights, biases = [], []
    for i in range(n_layers):
        key, sub = jax.random.split(key)
        fan_in, fan_out = dims[i], dims[i + 1]
        w = jax.random.normal(sub, (fan_in, fan_out), jnp.float32) * jnp.sqrt(
            2.0 / fan_in)
        weights.append(w)
        biases.append(jnp.zeros((fan_out,), jnp.float32))
    return weights, biases


def reference_forward(x, weights, biases, *, use_bf16=False):
    """Pure-JAX reference on the ORIGINAL (unpadded, f32) params.  With
    use_bf16=True it mirrors the kernel numerics exactly (bf16 matmul inputs,
    f32 accumulation, f32 bias/ReLU, bf16 output store)."""
    cdt = jnp.bfloat16 if use_bf16 else jnp.float32
    n = len(weights)
    h = x.astype(cdt)
    for i, (w, b) in enumerate(zip(weights, biases)):
        h = jnp.dot(h, w.astype(cdt), preferred_element_type=jnp.float32) + b
        if i < n - 1:
            h = jnp.maximum(h, 0.0).astype(cdt)
    if use_bf16:  # mirror the kernel's bf16 output store
        h = h.astype(jnp.bfloat16)
    return h.astype(jnp.float32)


if __name__ == "__main__":
    input_dim, hidden_dim, output_dim, n_layers = 32, 64, 1, 5

    key = jax.random.PRNGKey(0)
    key, kx_small, kx_big = jax.random.split(key, 3)

    weights, biases = init_params(key, input_dim, hidden_dim, output_dim,
                                  n_layers)
    # One-time parameter prep (lane padding to 128, slab packing, bf16 cast).
    w_slab, b_slab, layer_in_dims, lane, out_dim = prepare_params(
        weights, biases, use_bf16=True)

    fwd = jax.jit(factor_reward_model_forward,
                  static_argnames=("layer_in_dims", "lane", "out_dim",
                                   "batch_tile", "use_bf16", "two_tc"))

    # Small batch: single grid step on 1-TC chips (no forced split).
    x_small = jax.random.normal(kx_small, (16, input_dim), jnp.float32)
    # Larger batch: one step on v5e/v6e, one step per TensorCore on v7x.
    x_big = jax.random.normal(kx_big, (512, input_dim), jnp.float32)

    for x in (x_small, x_big):
        out = jax.block_until_ready(
            fwd(x, w_slab, b_slab, layer_in_dims=layer_in_dims, lane=lane,
                out_dim=out_dim, use_bf16=True))
        assert out.shape == (x.shape[0], output_dim), out.shape

        # Tight check against a bf16-equivalent JAX reference.
        ref_bf16 = reference_forward(x, weights, biases, use_bf16=True)
        err_bf16 = float(jnp.max(jnp.abs(out - ref_bf16)))
        assert jnp.allclose(out, ref_bf16, atol=1e-2, rtol=1e-2), (
            f"bf16-ref max abs err {err_bf16}")

        # Sanity check against the full-f32 reference (bf16 rounding tolerance).
        ref_f32 = reference_forward(x, weights, biases, use_bf16=False)
        err_f32 = float(jnp.max(jnp.abs(out - ref_f32)))
        assert jnp.allclose(out, ref_f32, atol=1.5e-1, rtol=5e-2), (
            f"f32-ref max abs err {err_f32}")

    print("KERNEL_OK")
</pallas_src>

<mosaic_0001>
module attributes {stable_mosaic.version = 11 : i64} {
  func.func @kernel(%arg0: i32, %arg1: memref<16x32xbf16, #tpu.memory_space<vmem>>, %arg2: memref<544x128xbf16, #tpu.memory_space<vmem>>, %arg3: memref<1x640xf32, #tpu.memory_space<vmem>>, %arg4: memref<16x128xbf16, #tpu.memory_space<vmem>>) attributes {dimension_semantics = [#tpu.dimension_semantics<parallel>], iteration_bounds = array<i64: 1>, scalar_prefetch = 0 : i64, scratch_operands = 0 : i64, tpu.core_type = #tpu.core_type<tc>, window_params = [{transform_indices = @transform_0, window_bounds = array<i64: 16, 32>}, {pipeline_mode = #tpu.pipeline_mode<synchronous>, transform_indices = @transform_1, window_bounds = array<i64: 544, 128>}, {pipeline_mode = #tpu.pipeline_mode<synchronous>, transform_indices = @transform_2, window_bounds = array<i64: 1, 640>}, {transform_indices = @transform_3, window_bounds = array<i64: 16, 128>}]} {
    %c0 = arith.constant 0 : index
    %c0_0 = arith.constant 0 : index
    %0 = vector.load %arg1[%c0, %c0_0] : memref<16x32xbf16, #tpu.memory_space<vmem>>, vector<16x32xbf16>
    %c0_1 = arith.constant 0 : index
    %c0_2 = arith.constant 0 : index
    %1 = vector.load %arg2[%c0_1, %c0_2] : memref<544x128xbf16, #tpu.memory_space<vmem>>, vector<32x128xbf16>
    %c0_3 = arith.constant 0 : index
    %c0_4 = arith.constant 0 : index
    %2 = vector.load %arg3[%c0_3, %c0_4] : memref<1x640xf32, #tpu.memory_space<vmem>>, vector<1x128xf32>
    %cst = arith.constant dense<0.000000e+00> : vector<16x128xf32>
    %3 = tpu.matmul %0, %1, %cst {dimension_numbers = #tpu.dot_dimension_numbers<[1], [0], [0], [1], [0, 0, 1, 1], [], []>} : vector<16x32xbf16>, vector<32x128xbf16>, vector<16x128xf32> -> vector<16x128xf32>
    %4 = vector.broadcast %2 : vector<1x128xf32> to vector<16x128xf32>
    %5 = arith.addf %3, %4 : vector<16x128xf32>
    %cst_5 = arith.constant 0.000000e+00 : f32
    %6 = vector.broadcast %cst_5 : f32 to vector<16x128xf32>
    %7 = arith.maximumf %5, %6 : vector<16x128xf32>
    %8 = arith.truncf %7 : vector<16x128xf32> to vector<16x128xbf16>
    %c32 = arith.constant 32 : index
    %c0_6 = arith.constant 0 : index
    %9 = vector.load %arg2[%c32, %c0_6] : memref<544x128xbf16, #tpu.memory_space<vmem>>, vector<128x128xbf16>
    %c0_7 = arith.constant 0 : index
    %c128 = arith.constant 128 : index
    %10 = vector.load %arg3[%c0_7, %c128] : memref<1x640xf32, #tpu.memory_space<vmem>>, vector<1x128xf32>
    %cst_8 = arith.constant dense<0.000000e+00> : vector<16x128xf32>
    %11 = tpu.matmul %8, %9, %cst_8 {dimension_numbers = #tpu.dot_dimension_numbers<[1], [0], [0], [1], [0, 0, 1, 1], [], []>} : vector<16x128xbf16>, vector<128x128xbf16>, vector<16x128xf32> -> vector<16x128xf32>
    %12 = vector.broadcast %10 : vector<1x128xf32> to vector<16x128xf32>
    %13 = arith.addf %11, %12 : vector<16x128xf32>
    %cst_9 = arith.constant 0.000000e+00 : f32
    %14 = vector.broadcast %cst_9 : f32 to vector<16x128xf32>
    %15 = arith.maximumf %13, %14 : vector<16x128xf32>
    %16 = arith.truncf %15 : vector<16x128xf32> to vector<16x128xbf16>
    %c160 = arith.constant 160 : index
    %c0_10 = arith.constant 0 : index
    %17 = vector.load %arg2[%c160, %c0_10] : memref<544x128xbf16, #tpu.memory_space<vmem>>, vector<128x128xbf16>
    %c0_11 = arith.constant 0 : index
    %c256 = arith.constant 256 : index
    %18 = vector.load %arg3[%c0_11, %c256] : memref<1x640xf32, #tpu.memory_space<vmem>>, vector<1x128xf32>
    %cst_12 = arith.constant dense<0.000000e+00> : vector<16x128xf32>
    %19 = tpu.matmul %16, %17, %cst_12 {dimension_numbers = #tpu.dot_dimension_numbers<[1], [0], [0], [1], [0, 0, 1, 1], [], []>} : vector<16x128xbf16>, vector<128x128xbf16>, vector<16x128xf32> -> vector<16x128xf32>
    %20 = vector.broadcast %18 : vector<1x128xf32> to vector<16x128xf32>
    %21 = arith.addf %19, %20 : vector<16x128xf32>
    %cst_13 = arith.constant 0.000000e+00 : f32
    %22 = vector.broadcast %cst_13 : f32 to vector<16x128xf32>
    %23 = arith.maximumf %21, %22 : vector<16x128xf32>
    %24 = arith.truncf %23 : vector<16x128xf32> to vector<16x128xbf16>
    %c288 = arith.constant 288 : index
    %c0_14 = arith.constant 0 : index
    %25 = vector.load %arg2[%c288, %c0_14] : memref<544x128xbf16, #tpu.memory_space<vmem>>, vector<128x128xbf16>
    %c0_15 = arith.constant 0 : index
    %c384 = arith.constant 384 : index
    %26 = vector.load %arg3[%c0_15, %c384] : memref<1x640xf32, #tpu.memory_space<vmem>>, vector<1x128xf32>
    %cst_16 = arith.constant dense<0.000000e+00> : vector<16x128xf32>
    %27 = tpu.matmul %24, %25, %cst_16 {dimension_numbers = #tpu.dot_dimension_numbers<[1], [0], [0], [1], [0, 0, 1, 1], [], []>} : vector<16x128xbf16>, vector<128x128xbf16>, vector<16x128xf32> -> vector<16x128xf32>
    %28 = vector.broadcast %26 : vector<1x128xf32> to vector<16x128xf32>
    %29 = arith.addf %27, %28 : vector<16x128xf32>
    %cst_17 = arith.constant 0.000000e+00 : f32
    %30 = vector.broadcast %cst_17 : f32 to vector<16x128xf32>
    %31 = arith.maximumf %29, %30 : vector<16x128xf32>
    %32 = arith.truncf %31 : vector<16x128xf32> to vector<16x128xbf16>
    %c416 = arith.constant 416 : index
    %c0_18 = arith.constant 0 : index
    %33 = vector.load %arg2[%c416, %c0_18] : memref<544x128xbf16, #tpu.memory_space<vmem>>, vector<128x128xbf16>
    %c0_19 = arith.constant 0 : index
    %c512 = arith.constant 512 : index
    %34 = vector.load %arg3[%c0_19, %c512] : memref<1x640xf32, #tpu.memory_space<vmem>>, vector<1x128xf32>
    %cst_20 = arith.constant dense<0.000000e+00> : vector<16x128xf32>
    %35 = tpu.matmul %32, %33, %cst_20 {dimension_numbers = #tpu.dot_dimension_numbers<[1], [0], [0], [1], [0, 0, 1, 1], [], []>} : vector<16x128xbf16>, vector<128x128xbf16>, vector<16x128xf32> -> vector<16x128xf32>
    %36 = vector.broadcast %34 : vector<1x128xf32> to vector<16x128xf32>
    %37 = arith.addf %35, %36 : vector<16x128xf32>
    %38 = arith.truncf %37 : vector<16x128xf32> to vector<16x128xbf16>
    %c0_21 = arith.constant 0 : index
    %c0_22 = arith.constant 0 : index
    %39 = vector.load %arg4[%c0_21, %c0_22] : memref<16x128xbf16, #tpu.memory_space<vmem>>, vector<16x128xbf16>
    tpu.vector_store %arg4[%c0_21, %c0_22], %38 {strides = array<i32>} : memref<16x128xbf16, #tpu.memory_space<vmem>>, vector<16x128xbf16>,
    return
  }
  func.func @transform_0(%arg0: i32) -> (i32, i32) {
    %c0_i32 = arith.constant 0 : i32
    %c0_i32_0 = arith.constant 0 : i32
    return %arg0, %c0_i32 : i32, i32
  }
  func.func @transform_1(%arg0: i32) -> (i32, i32) {
    %c0_i32 = arith.constant 0 : i32
    %c0_i32_0 = arith.constant 0 : i32
    %c0_i32_1 = arith.constant 0 : i32
    return %c0_i32, %c0_i32_0 : i32, i32
  }
  func.func @transform_2(%arg0: i32) -> (i32, i32) {
    %c0_i32 = arith.constant 0 : i32
    %c0_i32_0 = arith.constant 0 : i32
    %c0_i32_1 = arith.constant 0 : i32
    return %c0_i32, %c0_i32_0 : i32, i32
  }
  func.func @transform_3(%arg0: i32) -> (i32, i32) {
    %c0_i32 = arith.constant 0 : i32
    %c0_i32_0 = arith.constant 0 : i32
    return %arg0, %c0_i32 : i32, i32
  }
}

</mosaic_0001>

<bundles_post_ra>
// kernel: factor_reward_model_forward.1
= control target key start
LH: loop header
LB: loop body
LE: loop exit
PB: predicated region body
PF: predicated region fallthrough
CT: control target
= control target key end

     0   :  { %8 = vsyncpa [#allocation3], 0  ;;  %s820_s12 = smov [#allocation2]   ;;  %s922_s0 = inlined_call_operand.vmem [shape: bf16[16,32], index: 0, kind: input, shape index: {}]   ;;  %s923_s1 = inlined_call_operand.hbm [shape: bf16[544,128], index: 1, kind: input, shape index: {}]   ;;  %s924_s2 = inlined_call_operand.vmem [shape: f32[1,640], index: 2, kind: input, shape index: {}]   ;;  %s925_s3 = inlined_call_operand.vmem [shape: bf16[16,128], index: 3, kind: output, shape index: {}]  }
   0x1   :  { %s16_s13 = sshll.u32 %s820_s12, 4  ;;  %s796_s16 = scalar_lea.hbm %s923_s1, 4352  ;;  %s17_s13 = int_to_ptr.vmem [resolvable:$true] %s16_s13 }
   0x2   :  { %p797_p0 = scmp.ne.s32.totalorder %s923_s1, %s796_s16  ;;  %p800_p1 = scmp.lt.u32.totalorder %s796_s16, %s923_s1 }
   0x4   :  { %p802_p2 = pnand %p800_p1, %p797_p0 }
   0x6   :  { %805 = shalt.err (!%p802_p2)
}
   0x7   :  { %s806_s21 = scalar_lea.vmem %s17_s13, 4352  ;;  %p811_p4 = scmp.lt.s32.totalorder %s17_s13, %s17_s13 }
   0x8   :  { %p807_p3 = scmp.ne.s32.totalorder %s17_s13, %s806_s21  ;;  %p812_p5 = scmp.lt.s32.totalorder %s806_s21, %s806_s21 }
   0xa   :  { %p813_p6 = por %p812_p5, %p811_p4 }
   0xc   :  { %p814_p7 = pnand %p813_p6, %p807_p3 }
   0xe   :  { %817 = shalt.err (!%p814_p7)
}
   0xf   :  { %s821_s22 = smov 64   ;;  %s822_s23 = smov 4  }
  0x10   :  { %22 = dma.hbm_to_vmem [thread:$0]  %s923_s1, 4352, %s17_s13, [#allocation3], %s821_s22, %s821_s22, %s822_s23  }
  0x11   :  { %818 = dma.done.wait [#allocation3], 4352  }
  0x12   :  { %819 = vsyncadd [#allocation3], 4294962944  ;;  %v823_v0 = vmov 0.0   ;;  %vm824_vm0 = vmmov 0   ;;  %v761_v1 = vld [vmem:[#allocation2] sm:$0xff]   ;;  %v762_v2 = vld [vmem:[#allocation2 + $0x8] sm:$0xff]  }
  0x13   :  { %668 = vmatprep.subr.bf16.mxu0 %v823_v0  ;;  %672 = vmatprep.mubr.msk.bf16.mxu0 %vm824_vm0, %v823_v0  ;;  %v764_v3 = vld [vmem:[#allocation2 + $0x10] sm:$0xff]   ;;  %v763_v4 = vld [vmem:[%s922_s0] sm:$0xff]   ;;  %v765_v5 = vld [vmem:[#allocation2 + $0x18] sm:$0xff]   ;;  %vm59_vm1 = vcmask 261120  }
  0x14   :  { %676 = vmatprep.subr.bf16.mxu1 %v823_v0  ;;  %692 = vmatprep.mubr.msk.bf16.mxu1 %vm824_vm0, %v823_v0  ;;  %v766_v6 = vld [vmem:[#allocation2 + $0x20] sm:$0xff]   ;;  %v767_v7 = vld [vmem:[#allocation2 + $0x28] sm:$0xff]   ;;  %v768_v8 = vld [vmem:[#allocation2 + $0x30] sm:$0xff]  }
  0x15   :  { %669 = vmatpush3.bf16.msra.mxu0 %v761_v1  ;;  %677 = vmatpush3.bf16.msra.mxu1 %v764_v3  ;;  %v769_v9 = vld [vmem:[#allocation2 + $0x38] sm:$0xff]   ;;  %v770_v10 = vld [vmem:[#allocation2 + $0x40] sm:$0xff]   ;;  %v771_v11 = vld [vmem:[#allocation2 + $0x48] sm:$0xff]  }
  0x16   :  { %670 = vmatprep.subr.bf16.mxu0 %v823_v0  ;;  %678 = vmatprep.subr.bf16.mxu1 %v823_v0  ;;  %v772_v12 = vld [vmem:[#allocation2 + $0x50] sm:$0xff]   ;;  %v773_v13 = vld [vmem:[#allocation2 + $0x58] sm:$0xff]   ;;  %v774_v14 = vld [vmem:[#allocation2 + $0x60] sm:$0xff]  }
  0x17   :  { %v775_v15 = vld [vmem:[#allocation2 + $0x68] sm:$0xff]   ;;  %v776_v16 = vld [vmem:[#allocation2 + $0x70] sm:$0xff]   ;;  %v777_v17 = vld [vmem:[#allocation2 + $0x78] sm:$0xff]  }
  0x18   :  { %v579_v18 = vld [vmem:[%s924_s2] ss:$0 sm:$0xff]  ;;  %v779_v29 = vld [vmem:[#allocation2 + $0x88] sm:$0xff]   ;;  %v780_v30 = vld [vmem:[#allocation2 + $0x90] sm:$0xff]  }
  0x19   :  { %671 = vmatpush3.bf16.msra.mxu0 %v762_v2  ;;  %679 = vmatpush3.bf16.msra.mxu1 %v765_v5  ;;  %v778_v28 = vld [vmem:[#allocation2 + $0x80] sm:$0xff]   ;;  %v781_v31 = vld [vmem:[#allocation2 + $0x98] sm:$0xff]   ;;  %v783_v33 = vld [vmem:[#allocation2 + $0xa8] sm:$0xff]  }
  0x1a   :  { %696 = vmatprep.subr.bf16.mxu0 %v823_v0  ;;  %680 = vmatprep.subr.bf16.mxu1 %v823_v0  ;;  %v782_v32 = vld [vmem:[#allocation2 + $0xa0] sm:$0xff]   ;;  %v784_v34 = vld [vmem:[#allocation2 + $0xb0] sm:$0xff]   ;;  %v785_v35 = vld [vmem:[#allocation2 + $0xb8] sm:$0xff]  }
  0x1b   :  { %v584_v36 = vld [vmem:[%s924_s2 + $0x1] ss:$0 sm:$0xff]  ;;  %v787_v47 = vld [vmem:[#allocation2 + $0xc8] sm:$0xff]   ;;  %v788_v48 = vld [vmem:[#allocation2 + $0xd0] sm:$0xff]  }
  0x1c   :  { %673 = vmatmul.mubr.msk.bf16.vlgmr.msra.gmra.mrb[0].mxu0 %vm59_vm1, %v763_v4  ;;  %v786_v46 = vld [vmem:[#allocation2 + $0xc0] sm:$0xff]   ;;  %v789_v49 = vld [vmem:[#allocation2 + $0xd8] sm:$0xff]   ;;  %v791_v51 = vld [vmem:[#allocation2 + $0xe8] sm:$0xff]  }
  0x1d   :  { %712 = vmatprep.mubr.msk.bf16.mxu0 %vm824_vm0, %v823_v0  ;;  %681 = vmatpush3.bf16.msra.mxu1 %v766_v6  ;;  %v790_v50 = vld [vmem:[#allocation2 + $0xe0] sm:$0xff]   ;;  %v792_v52 = vld [vmem:[#allocation2 + $0xf0] sm:$0xff]   ;;  %v793_v53 = vld [vmem:[#allocation2 + $0xf8] sm:$0xff]  }
  0x1e   :  { %682 = vmatprep.subr.bf16.mxu1 %v823_v0  ;;  %697 = vmatpush3.bf16.msra.mxu0 %v772_v12  ;;  %v593_v54 = vld [vmem:[%s924_s2 + $0x2] ss:$0 sm:$0xff]  ;;  %v795_v2 = vld [vmem:[#allocation2 + $0x108] sm:$0xff]   ;;  %v602_v3 = vld [vmem:[%s924_s2 + $0x3] ss:$0 sm:$0xff] }
  0x1f   :  { %698 = vmatprep.subr.bf16.mxu0 %v823_v0  ;;  %v794_v1 = vld [vmem:[#allocation2 + $0x100] sm:$0xff]  }
  0x21   :  { %683 = vmatpush3.bf16.msra.mxu1 %v767_v7 }
  0x22   :  { %684 = vmatprep.subr.bf16.mxu1 %v823_v0  ;;  %699 = vmatpush3.bf16.msra.mxu0 %v773_v13 }
  0x23   :  { %700 = vmatprep.subr.bf16.mxu0 %v823_v0 }
  0x25   :  { %685 = vmatpush3.bf16.msra.mxu1 %v768_v8 }
  0x26   :  { %686 = vmatprep.subr.bf16.mxu1 %v823_v0  ;;  %701 = vmatpush3.bf16.msra.mxu0 %v774_v14 }
  0x27   :  { %702 = vmatprep.subr.bf16.mxu0 %v823_v0 }
  0x29   :  { %687 = vmatpush3.bf16.msra.mxu1 %v769_v9 }
  0x2a   :  { %688 = vmatprep.subr.bf16.mxu1 %v823_v0  ;;  %703 = vmatpush3.bf16.msra.mxu0 %v775_v15 }
  0x2b   :  { %704 = vmatprep.subr.bf16.mxu0 %v823_v0 }
  0x2d   :  { %689 = vmatpush3.bf16.msra.mxu1 %v770_v10 }
  0x2e   :  { %690 = vmatprep.subr.bf16.mxu1 %v823_v0  ;;  %705 = vmatpush3.bf16.msra.mxu0 %v776_v16 }
  0x2f   :  { %706 = vmatprep.subr.bf16.mxu0 %v823_v0 }
  0x31   :  { %691 = vmatpush3.bf16.msra.mxu1 %v771_v11 }
  0x32   :  { %716 = vmatprep.subr.bf16.mxu1 %v823_v0  ;;  %707 = vmatpush3.bf16.msra.mxu0 %v777_v17 }
  0x33   :  { %708 = vmatprep.subr.bf16.mxu0 %v823_v0 }
  0x36   :  { %709 = vmatpush3.bf16.msra.mxu0 %v778_v28 }
  0x37   :  { %710 = vmatprep.subr.bf16.mxu0 %v823_v0 }
  0x3a   :  { %711 = vmatpush3.bf16.msra.mxu0 %v779_v29 }
  0x3b   :  { %736 = vmatprep.subr.bf16.mxu0 %v823_v0 }
  0xef   :  { %v97_v19 = vpop.f32.mrb[0].mxu0 }
  0xf0   :  { %v98_v20 = vadd.f32 %v579_v18, %v97_v19  ;;  %v674_v21 = vpop.f32.mrb[1].mxu0 }
  0xf1   :  { %v100_v22 = vpop.f32.mrb[2].mxu0 }
  0xf2   :  { %v101_v23 = vadd.f32 %v579_v18, %v100_v22  ;;  %v675_v24 = vpop.f32.mrb[3].mxu0  ;;  %v104_v25 = vmax.f32 %v98_v20, 0.0 }
  0xf4   :  { %v105_v26 = vmax.f32 %v101_v23, 0.0 }
  0xf6   :  { %v106_v27 = vpack.c.bf16 %v105_v26, %v104_v25 }
  0xf8   :  { %693 = vmatmul.mubr.bf16.vlgmr.msra.gmra.mrb[0].mxu1 %v106_v27 }
  0xf9   :  { %732 = vmatprep.mubr.msk.bf16.mxu1 %vm824_vm0, %v823_v0  ;;  %717 = vmatpush3.bf16.msra.mxu1 %v780_v30 }
  0xfa   :  { %718 = vmatprep.subr.bf16.mxu1 %v823_v0 }
  0xfd   :  { %719 = vmatpush3.bf16.msra.mxu1 %v781_v31 }
  0xfe   :  { %720 = vmatprep.subr.bf16.mxu1 %v823_v0 }
 0x101   :  { %721 = vmatpush3.bf16.msra.mxu1 %v782_v32 }
 0x102   :  { %722 = vmatprep.subr.bf16.mxu1 %v823_v0 }
 0x105   :  { %723 = vmatpush3.bf16.msra.mxu1 %v783_v33 }
 0x106   :  { %724 = vmatprep.subr.bf16.mxu1 %v823_v0 }
 0x109   :  { %725 = vmatpush3.bf16.msra.mxu1 %v784_v34 }
 0x10a   :  { %726 = vmatprep.subr.bf16.mxu1 %v823_v0 }
 0x10d   :  { %727 = vmatpush3.bf16.msra.mxu1 %v785_v35 }
 0x10e   :  { %728 = vmatprep.subr.bf16.mxu1 %v823_v0 }
 0x111   :  { %729 = vmatpush3.bf16.msra.mxu1 %v786_v46 }
 0x112   :  { %730 = vmatprep.subr.bf16.mxu1 %v823_v0 }
 0x115   :  { %731 = vmatpush3.bf16.msra.mxu1 %v787_v47 }
 0x1cb   :  { %v212_v37 = vpop.f32.mrb[0].mxu1 }
 0x1cc   :  { %v213_v38 = vadd.f32 %v584_v36, %v212_v37  ;;  %v694_v39 = vpop.f32.mrb[1].mxu1 }
 0x1cd   :  { %v215_v40 = vpop.f32.mrb[2].mxu1 }
 0x1ce   :  { %v216_v41 = vadd.f32 %v584_v36, %v215_v40  ;;  %v695_v42 = vpop.f32.mrb[3].mxu1  ;;  %v219_v43 = vmax.f32 %v213_v38, 0.0 }
 0x1d0   :  { %v220_v44 = vmax.f32 %v216_v41, 0.0 }
 0x1d2   :  { %v221_v45 = vpack.c.bf16 %v220_v44, %v219_v43 }
 0x1d4   :  { %713 = vmatmul.mubr.bf16.vlgmr.msra.gmra.mrb[4].mxu0 %v221_v45 }
 0x1d5   :  { %752 = vmatprep.mubr.msk.bf16.mxu0 %vm824_vm0, %v823_v0  ;;  %737 = vmatpush3.bf16.msra.mxu0 %v788_v48 }
 0x1d6   :  { %738 = vmatprep.subr.bf16.mxu0 %v823_v0 }
 0x1d9   :  { %739 = vmatpush3.bf16.msra.mxu0 %v789_v49 }
 0x1da   :  { %740 = vmatprep.subr.bf16.mxu0 %v823_v0 }
 0x1dd   :  { %741 = vmatpush3.bf16.msra.mxu0 %v790_v50 }
 0x1de   :  { %742 = vmatprep.subr.bf16.mxu0 %v823_v0 }
 0x1e1   :  { %743 = vmatpush3.bf16.msra.mxu0 %v791_v51 }
 0x1e2   :  { %744 = vmatprep.subr.bf16.mxu0 %v823_v0 }
 0x1e5   :  { %745 = vmatpush3.bf16.msra.mxu0 %v792_v52 }
 0x1e6   :  { %746 = vmatprep.subr.bf16.mxu0 %v823_v0 }
 0x1e9   :  { %747 = vmatpush3.bf16.msra.mxu0 %v793_v53 }
 0x1ea   :  { %748 = vmatprep.subr.bf16.mxu0 %v823_v0 }
 0x1ed   :  { %749 = vmatpush3.bf16.msra.mxu0 %v794_v1 }
 0x1ee   :  { %750 = vmatprep.subr.bf16.mxu0 %v823_v0  ;;  %v611_v0 = vld [vmem:[%s924_s2 + $0x4] ss:$0 sm:$0xff] }
 0x1f1   :  { %751 = vmatpush3.bf16.msra.mxu0 %v795_v2 }
 0x2a7   :  { %v327_v55 = vpop.f32.mrb[4].mxu0 }
 0x2a8   :  { %v328_v56 = vadd.f32 %v593_v54, %v327_v55  ;;  %v714_v57 = vpop.f32.mrb[5].mxu0 }
 0x2a9   :  { %v330_v58 = vpop.f32.mrb[6].mxu0 }
 0x2aa   :  { %v331_v59 = vadd.f32 %v593_v54, %v330_v58  ;;  %v715_v60 = vpop.f32.mrb[7].mxu0  ;;  %v334_v61 = vmax.f32 %v328_v56, 0.0 }
 0x2ac   :  { %v335_v62 = vmax.f32 %v331_v59, 0.0 }
 0x2ae   :  { %v336_v63 = vpack.c.bf16 %v335_v62, %v334_v61 }
 0x2b0   :  { %733 = vmatmul.mubr.bf16.vlgmr.msra.gmra.mrb[4].mxu1 %v336_v63 }
 0x383   :  { %v442_v4 = vpop.f32.mrb[4].mxu1 }
 0x384   :  { %v443_v5 = vadd.f32 %v602_v3, %v442_v4  ;;  %v734_v6 = vpop.f32.mrb[5].mxu1 }
 0x385   :  { %v445_v7 = vpop.f32.mrb[6].mxu1 }
 0x386   :  { %v446_v8 = vadd.f32 %v602_v3, %v445_v7  ;;  %v735_v9 = vpop.f32.mrb[7].mxu1  ;;  %v449_v10 = vmax.f32 %v443_v5, 0.0 }
 0x388   :  { %v450_v11 = vmax.f32 %v446_v8, 0.0 }
 0x38a   :  { %v451_v12 = vpack.c.bf16 %v450_v11, %v449_v10 }
 0x38c   :  { %753 = vmatmul.mubr.bf16.vlgmr.msra.gmra.mrb[8].mxu0 %v451_v12 }
 0x45f   :  { %v557_v13 = vpop.f32.mrb[8].mxu0 }
 0x460   :  { %v754_v14 = vpop.f32.mrb[9].mxu0  ;;  %v558_v16 = vadd.f32 %v611_v0, %v557_v13 }
 0x461   :  { %v560_v15 = vpop.f32.mrb[10].mxu0 }
 0x462   :  { %v561_v17 = vadd.f32 %v611_v0, %v560_v15  ;;  %v755_v18 = vpop.f32.mrb[11].mxu0 }
 0x464   :  { %v627_v19 = vpack.c.bf16 %v561_v17, %v558_v16 }
 0x466   :  { %628 = vst [vmem:[%s925_s3] sm:$0xff] %v627_v19  }
 0x467   :  { %578 = vsyncpa [#allocation3], 1 }

</bundles_post_ra>
